<compile_context>
chip_gen: v5e
topology: v5e:2x2
jax: 0.10.0
libtpu: 0.0.40
codegen_flags: <defaults>
</compile_context>

<pallas_src>
import functools

import jax
import jax.numpy as jnp
from jax.experimental import pallas as pl
from jax.experimental.pallas import tpu as pltpu


def _leaky_relu(x, slope=0.01):
    # matches torch.nn.LeakyReLU(negative_slope=0.01) default
    return jnp.where(x > 0, x, slope * x)


def _round_up(x, m):
    return (x + m - 1) // m * m


def make_widedeep_kernel(num_hidden_layers, compute_dtype):
    """Fused Wide&Deep forward for one batch tile, fixed MLP depth."""

    def kernel(*refs):
        # refs:
        #   deep_in,                       (TILE_B, K0)      compute_dtype
        #   (w_i, b_i) * L,                (Kpad, Hpad)/(1, Hpad)  bf16 / f32
        #   wws_row,                       (1, K0)   f32   w_wide * w_out_wide, zero-padded
        #   wod_row,                       (1, Hlast_pad) f32  deep slice of w_out
        #   b_total,                       (1, 1)    f32   b_wide*w_out_wide + b_out
        #   o_ref                          (TILE_B, 1) f32
        idx = 0
        deep_in_ref = refs[idx]; idx += 1
        hidden_refs = refs[idx: idx + 2 * num_hidden_layers]
        idx += 2 * num_hidden_layers
        wws_ref = refs[idx]; idx += 1
        wod_ref = refs[idx]; idx += 1
        b_ref = refs[idx]; idx += 1
        o_ref = refs[idx]

        x = deep_in_ref[...]                                   # (TILE_B, K0)

        # --- Wide part (folded): VPU multiply + lane reduction, no MXU ---
        wide = jnp.sum(x.astype(jnp.float32) * wws_ref[...],
                       axis=-1, keepdims=True)                 # (TILE_B, 1)

        # --- Deep part: MXU matmuls (bf16 in, f32 acc), f32 elementwise ---
        h = x
        for l in range(num_hidden_layers):
            w = hidden_refs[2 * l][...]
            b = hidden_refs[2 * l + 1][...]
            hf = jnp.dot(h, w, preferred_element_type=jnp.float32) + b
            hf = _leaky_relu(hf)
            h = hf.astype(compute_dtype) if l + 1 < num_hidden_layers else hf
        # reference nn.Sequential has one extra LeakyReLU after the MLP layers
        h = _leaky_relu(h)                                     # (TILE_B, Hlast_pad) f32

        # --- Output layer (folded): VPU multiply + lane reduction, sigmoid ---
        deep = jnp.sum(h * wod_ref[...], axis=-1, keepdims=True)
        logit = wide + deep + b_ref[...]
        o_ref[...] = jax.nn.sigmoid(logit)

    return kernel


def widedeep_forward(params, x_dense, x_sparse, *, tile_b=512,
                     compute_dtype=jnp.bfloat16):
    """Embedding gather + concat in JAX, batch-tiled fused MLP in Pallas."""
    f32 = jnp.float32
    B, dense_fea_num = x_dense.shape
    LANE = 128

    # --- glue: data-dependent embedding gathers + feature concat ---------
    # TODO(synk): fuse the per-row embedding gather into the kernel (scalar
    # prefetch + manual DMA) to avoid the deep_input HBM round trip.
    embeds = [params["embed_tables"][i][x_sparse[:, i]]
              for i in range(len(params["embed_tables"]))]
    deep_input = jnp.concatenate([x_dense] + embeds, axis=-1)  # (B, K0) f32
    K0 = deep_input.shape[1]

    # --- batch tiling ------------------------------------------------------
    tile_b = min(tile_b, _round_up(B, 8))
    b_pad = _round_up(B, tile_b)
    if b_pad != B:
        deep_input = jnp.pad(deep_input, ((0, b_pad - B), (0, 0)))
    deep_input = deep_input.astype(compute_dtype)
    num_tiles = b_pad // tile_b

    # --- parameter prep: lane-dense hidden widths, folded wide path --------
    hidden_arrays = []
    k_pad = K0
    for (w, b) in params["mlp"]:
        k_in, h_out = w.shape
        h_pad = _round_up(h_out, LANE)
        w_p = jnp.zeros((k_pad, h_pad), f32).at[:k_in, :h_out].set(w)
        b_p = jnp.zeros((1, h_pad), f32).at[:, :h_out].set(b)
        hidden_arrays += [w_p.astype(compute_dtype), b_p]
        k_pad = h_pad
    h_last_pad = k_pad

    # wide path folded into the output layer (zero numerical change)
    wws = (params["w_wide"] * params["w_out_wide"]).reshape(1, dense_fea_num)
    wws_row = jnp.zeros((1, K0), f32).at[:, :dense_fea_num].set(wws)
    wod = params["w_out_deep"].reshape(1, -1)
    wod_row = jnp.zeros((1, h_last_pad), f32).at[:, :wod.shape[1]].set(wod)
    b_total = (params["b_wide"] * params["w_out_wide"]
               + params["b_out"]).reshape(1, 1)

    resident_arrays = hidden_arrays + [wws_row, wod_row, b_total]
    inputs = [deep_input] + resident_arrays

    in_specs = (
        [pl.BlockSpec((tile_b, K0), lambda i: (i, 0))]
        + [pl.BlockSpec(a.shape, lambda i: (0, 0)) for a in resident_arrays]
    )
    out_spec = pl.BlockSpec((tile_b, 1), lambda i: (i, 0))

    out = pl.pallas_call(
        make_widedeep_kernel(len(params["mlp"]), compute_dtype),
        out_shape=jax.ShapeDtypeStruct((b_pad, 1), f32),
        grid=(num_tiles,),
        in_specs=in_specs,
        out_specs=out_spec,
        compiler_params=pltpu.CompilerParams(
            dimension_semantics=("parallel",)),
    )(*inputs)
    return out[:B]


def widedeep_reference(params, x_dense, x_sparse):
    """Pure-JAX f32 reference mirroring the PyTorch module exactly."""
    embeds = [params["embed_tables"][i][x_sparse[:, i]]
              for i in range(len(params["embed_tables"]))]
    deep_in = jnp.concatenate([x_dense] + embeds, axis=-1)
    h = deep_in
    for w, b in params["mlp"]:
        h = _leaky_relu(h @ w + b)
    h = _leaky_relu(h)  # trailing LeakyReLU in the nn.Sequential
    wide = x_dense @ params["w_wide"] + params["b_wide"]
    logit = wide * params["w_out_wide"] + h @ params["w_out_deep"] + params["b_out"]
    return jax.nn.sigmoid(logit)


def init_params(key, dense_fea_num, sparse_fea_num, sparse_fea_list,
                embed_dim, hidden_layers):
    n_keys = len(sparse_fea_list) + 2 * (1 + len(hidden_layers) + 1)
    keys = iter(jax.random.split(key, n_keys))

    def linear(fan_in, fan_out):
        # mimic torch.nn.Linear default init: U(-1/sqrt(fan_in), 1/sqrt(fan_in))
        bound = 1.0 / float(fan_in) ** 0.5
        w = jax.random.uniform(next(keys), (fan_in, fan_out), jnp.float32,
                               -bound, bound)
        b = jax.random.uniform(next(keys), (1, fan_out), jnp.float32,
                               -bound, bound)
        return w, b

    params = {}
    # nn.Embedding default init: N(0, 1)
    params["embed_tables"] = [
        jax.random.normal(next(keys), (n, embed_dim), jnp.float32)
        for n in sparse_fea_list
    ]
    params["w_wide"], params["b_wide"] = linear(dense_fea_num, 1)

    in_dim = dense_fea_num + sparse_fea_num * embed_dim
    mlp = []
    for out_dim in hidden_layers:
        mlp.append(linear(in_dim, out_dim))
        in_dim = out_dim
    params["mlp"] = mlp

    w_out, b_out = linear(1 + hidden_layers[-1], 1)
    params["w_out_wide"] = w_out[:1, :]    # (1, 1)       -> multiplies wide_out
    params["w_out_deep"] = w_out[1:, :]    # (H_last, 1)  -> multiplies deep_out
    params["b_out"] = b_out
    return params


if __name__ == "__main__":
    # small, module-consistent shapes
    dense_fea_num = 16
    sparse_fea_list = [10, 20, 30, 40]
    sparse_fea_num = len(sparse_fea_list)
    embed_dim = 8
    hidden_layers = [64, 32]
    batch = 8

    key = jax.random.PRNGKey(0)
    kp, kd, ks = jax.random.split(key, 3)

    params = init_params(kp, dense_fea_num, sparse_fea_num, sparse_fea_list,
                         embed_dim, hidden_layers)

    x_dense = jax.random.normal(kd, (batch, dense_fea_num), jnp.float32)
    x_sparse = jnp.stack(
        [jax.random.randint(jax.random.fold_in(ks, i), (batch,), 0, n)
         for i, n in enumerate(sparse_fea_list)], axis=1).astype(jnp.int32)

    fwd = jax.jit(functools.partial(widedeep_forward, tile_b=512,
                                    compute_dtype=jnp.bfloat16))
    out = jax.block_until_ready(fwd(params, x_dense, x_sparse))
    ref = jax.block_until_ready(widedeep_reference(params, x_dense, x_sparse))

    assert out.shape == (batch, 1)
    assert bool(jnp.all(jnp.isfinite(out)))
    assert bool(jnp.all((out >= 0.0) & (out <= 1.0)))
    # bf16 MXU operands (f32 accumulation) vs f32 reference -> small tolerance
    assert bool(jnp.max(jnp.abs(out - ref)) < 2e-2), (
        f"max abs err {float(jnp.max(jnp.abs(out - ref)))}")
    print("KERNEL_OK")
</pallas_src>

<mosaic_0001>
module attributes {stable_mosaic.version = 11 : i64} {
  func.func @kernel(%arg0: i32, %arg1: memref<8x48xbf16, #tpu.memory_space<vmem>>, %arg2: memref<48x128xbf16, #tpu.memory_space<vmem>>, %arg3: memref<1x128xf32, #tpu.memory_space<vmem>>, %arg4: memref<128x128xbf16, #tpu.memory_space<vmem>>, %arg5: memref<1x128xf32, #tpu.memory_space<vmem>>, %arg6: memref<1x48xf32, #tpu.memory_space<vmem>>, %arg7: memref<1x128xf32, #tpu.memory_space<vmem>>, %arg8: memref<1x1xf32, #tpu.memory_space<vmem>>, %arg9: memref<8x1xf32, #tpu.memory_space<vmem>>) attributes {dimension_semantics = [#tpu.dimension_semantics<parallel>], iteration_bounds = array<i64: 1>, scalar_prefetch = 0 : i64, scratch_operands = 0 : i64, tpu.core_type = #tpu.core_type<tc>, window_params = [{transform_indices = @transform_0, window_bounds = array<i64: 8, 48>}, {pipeline_mode = #tpu.pipeline_mode<synchronous>, transform_indices = @transform_1, window_bounds = array<i64: 48, 128>}, {pipeline_mode = #tpu.pipeline_mode<synchronous>, transform_indices = @transform_2, window_bounds = array<i64: 1, 128>}, {pipeline_mode = #tpu.pipeline_mode<synchronous>, transform_indices = @transform_3, window_bounds = array<i64: 128, 128>}, {pipeline_mode = #tpu.pipeline_mode<synchronous>, transform_indices = @transform_4, window_bounds = array<i64: 1, 128>}, {pipeline_mode = #tpu.pipeline_mode<synchronous>, transform_indices = @transform_5, window_bounds = array<i64: 1, 48>}, {pipeline_mode = #tpu.pipeline_mode<synchronous>, transform_indices = @transform_6, window_bounds = array<i64: 1, 128>}, {pipeline_mode = #tpu.pipeline_mode<synchronous>, transform_indices = @transform_7, window_bounds = array<i64: 1, 1>}, {transform_indices = @transform_8, window_bounds = array<i64: 8, 1>}]} {
    %c0 = arith.constant 0 : index
    %c0_0 = arith.constant 0 : index
    %0 = vector.load %arg1[%c0, %c0_0] : memref<8x48xbf16, #tpu.memory_space<vmem>>, vector<8x48xbf16>
    %1 = arith.extf %0 : vector<8x48xbf16> to vector<8x48xf32>
    %c0_1 = arith.constant 0 : index
    %c0_2 = arith.constant 0 : index
    %2 = vector.load %arg6[%c0_1, %c0_2] : memref<1x48xf32, #tpu.memory_space<vmem>>, vector<1x48xf32>
    %3 = vector.broadcast %2 : vector<1x48xf32> to vector<8x48xf32>
    %4 = arith.mulf %1, %3 : vector<8x48xf32>
    %cst = arith.constant dense<0.000000e+00> : vector<8xf32>
    %5 = vector.multi_reduction <add>, %4, %cst [1] : vector<8x48xf32> to vector<8xf32>
    %6 = vector.shape_cast %5 : vector<8xf32> to vector<8x1xf32>
    %c0_3 = arith.constant 0 : index
    %c0_4 = arith.constant 0 : index
    %7 = vector.load %arg2[%c0_3, %c0_4] : memref<48x128xbf16, #tpu.memory_space<vmem>>, vector<48x128xbf16>
    %c0_5 = arith.constant 0 : index
    %c0_6 = arith.constant 0 : index
    %8 = vector.load %arg3[%c0_5, %c0_6] : memref<1x128xf32, #tpu.memory_space<vmem>>, vector<1x128xf32>
    %cst_7 = arith.constant dense<0.000000e+00> : vector<8x128xf32>
    %9 = tpu.matmul %0, %7, %cst_7 {dimension_numbers = #tpu.dot_dimension_numbers<[1], [0], [0], [1], [0, 0, 1, 1], [], []>} : vector<8x48xbf16>, vector<48x128xbf16>, vector<8x128xf32> -> vector<8x128xf32>
    %10 = vector.broadcast %8 : vector<1x128xf32> to vector<8x128xf32>
    %11 = arith.addf %9, %10 : vector<8x128xf32>
    %cst_8 = arith.constant 0.000000e+00 : f32
    %12 = vector.broadcast %cst_8 : f32 to vector<8x128xf32>
    %13 = arith.cmpf ogt, %11, %12 : vector<8x128xf32>
    %cst_9 = arith.constant 0.00999999977 : f32
    %14 = vector.broadcast %cst_9 : f32 to vector<8x128xf32>
    %15 = arith.mulf %14, %11 : vector<8x128xf32>
    %16 = arith.select %13, %11, %15 : vector<8x128xi1>, vector<8x128xf32>
    %17 = arith.truncf %16 : vector<8x128xf32> to vector<8x128xbf16>
    %c0_10 = arith.constant 0 : index
    %c0_11 = arith.constant 0 : index
    %18 = vector.load %arg4[%c0_10, %c0_11] : memref<128x128xbf16, #tpu.memory_space<vmem>>, vector<128x128xbf16>
    %c0_12 = arith.constant 0 : index
    %c0_13 = arith.constant 0 : index
    %19 = vector.load %arg5[%c0_12, %c0_13] : memref<1x128xf32, #tpu.memory_space<vmem>>, vector<1x128xf32>
    %cst_14 = arith.constant dense<0.000000e+00> : vector<8x128xf32>
    %20 = tpu.matmul %17, %18, %cst_14 {dimension_numbers = #tpu.dot_dimension_numbers<[1], [0], [0], [1], [0, 0, 1, 1], [], []>} : vector<8x128xbf16>, vector<128x128xbf16>, vector<8x128xf32> -> vector<8x128xf32>
    %21 = vector.broadcast %19 : vector<1x128xf32> to vector<8x128xf32>
    %22 = arith.addf %20, %21 : vector<8x128xf32>
    %cst_15 = arith.constant 0.000000e+00 : f32
    %23 = vector.broadcast %cst_15 : f32 to vector<8x128xf32>
    %24 = arith.cmpf ogt, %22, %23 : vector<8x128xf32>
    %cst_16 = arith.constant 0.00999999977 : f32
    %25 = vector.broadcast %cst_16 : f32 to vector<8x128xf32>
    %26 = arith.mulf %25, %22 : vector<8x128xf32>
    %27 = arith.select %24, %22, %26 : vector<8x128xi1>, vector<8x128xf32>
    %cst_17 = arith.constant 0.000000e+00 : f32
    %28 = vector.broadcast %cst_17 : f32 to vector<8x128xf32>
    %29 = arith.cmpf ogt, %27, %28 : vector<8x128xf32>
    %cst_18 = arith.constant 0.00999999977 : f32
    %30 = vector.broadcast %cst_18 : f32 to vector<8x128xf32>
    %31 = arith.mulf %30, %27 : vector<8x128xf32>
    %32 = arith.select %29, %27, %31 : vector<8x128xi1>, vector<8x128xf32>
    %c0_19 = arith.constant 0 : index
    %c0_20 = arith.constant 0 : index
    %33 = vector.load %arg7[%c0_19, %c0_20] : memref<1x128xf32, #tpu.memory_space<vmem>>, vector<1x128xf32>
    %34 = vector.broadcast %33 : vector<1x128xf32> to vector<8x128xf32>
    %35 = arith.mulf %32, %34 : vector<8x128xf32>
    %cst_21 = arith.constant dense<0.000000e+00> : vector<8xf32>
    %36 = vector.multi_reduction <add>, %35, %cst_21 [1] : vector<8x128xf32> to vector<8xf32>
    %37 = vector.shape_cast %36 : vector<8xf32> to vector<8x1xf32>
    %38 = arith.addf %6, %37 : vector<8x1xf32>
    %c0_22 = arith.constant 0 : index
    %c0_23 = arith.constant 0 : index
    %39 = vector.load %arg8[%c0_22, %c0_23] : memref<1x1xf32, #tpu.memory_space<vmem>>, vector<1x1xf32>
    %40 = vector.broadcast %39 : vector<1x1xf32> to vector<8x1xf32>
    %41 = arith.addf %38, %40 : vector<8x1xf32>
    %42 = arith.negf %41 : vector<8x1xf32>
    %43 = math.exp %42 : vector<8x1xf32>
    %cst_24 = arith.constant 1.000000e+00 : f32
    %44 = vector.broadcast %cst_24 : f32 to vector<8x1xf32>
    %45 = arith.addf %44, %43 : vector<8x1xf32>
    %46 = arith.divf %44, %45 : vector<8x1xf32>
    %c0_25 = arith.constant 0 : index
    %c0_26 = arith.constant 0 : index
    %47 = vector.load %arg9[%c0_25, %c0_26] : memref<8x1xf32, #tpu.memory_space<vmem>>, vector<8x1xf32>
    tpu.vector_store %arg9[%c0_25, %c0_26], %46 {strides = array<i32>} : memref<8x1xf32, #tpu.memory_space<vmem>>, vector<8x1xf32>,
    return
  }
  func.func @transform_0(%arg0: i32) -> (i32, i32) {
    %c0_i32 = arith.constant 0 : i32
    %c0_i32_0 = arith.constant 0 : i32
    return %arg0, %c0_i32 : i32, i32
  }
  func.func @transform_1(%arg0: i32) -> (i32, i32) {
    %c0_i32 = arith.constant 0 : i32
    %c0_i32_0 = arith.constant 0 : i32
    %c0_i32_1 = arith.constant 0 : i32
    return %c0_i32, %c0_i32_0 : i32, i32
  }
  func.func @transform_2(%arg0: i32) -> (i32, i32) {
    %c0_i32 = arith.constant 0 : i32
    %c0_i32_0 = arith.constant 0 : i32
    %c0_i32_1 = arith.constant 0 : i32
    return %c0_i32, %c0_i32_0 : i32, i32
  }
  func.func @transform_3(%arg0: i32) -> (i32, i32) {
    %c0_i32 = arith.constant 0 : i32
    %c0_i32_0 = arith.constant 0 : i32
    %c0_i32_1 = arith.constant 0 : i32
    return %c0_i32, %c0_i32_0 : i32, i32
  }
  func.func @transform_4(%arg0: i32) -> (i32, i32) {
    %c0_i32 = arith.constant 0 : i32
    %c0_i32_0 = arith.constant 0 : i32
    %c0_i32_1 = arith.constant 0 : i32
    return %c0_i32, %c0_i32_0 : i32, i32
  }
  func.func @transform_5(%arg0: i32) -> (i32, i32) {
    %c0_i32 = arith.constant 0 : i32
    %c0_i32_0 = arith.constant 0 : i32
    %c0_i32_1 = arith.constant 0 : i32
    return %c0_i32, %c0_i32_0 : i32, i32
  }
  func.func @transform_6(%arg0: i32) -> (i32, i32) {
    %c0_i32 = arith.constant 0 : i32
    %c0_i32_0 = arith.constant 0 : i32
    %c0_i32_1 = arith.constant 0 : i32
    return %c0_i32, %c0_i32_0 : i32, i32
  }
  func.func @transform_7(%arg0: i32) -> (i32, i32) {
    %c0_i32 = arith.constant 0 : i32
    %c0_i32_0 = arith.constant 0 : i32
    %c0_i32_1 = arith.constant 0 : i32
    return %c0_i32, %c0_i32_0 : i32, i32
  }
  func.func @transform_8(%arg0: i32) -> (i32, i32) {
    %c0_i32 = arith.constant 0 : i32
    %c0_i32_0 = arith.constant 0 : i32
    return %arg0, %c0_i32 : i32, i32
  }
}

</mosaic_0001>

<bundles_post_ra>
// kernel: widedeep_forward.1
= control target key start
LH: loop header
LB: loop body
LE: loop exit
PB: predicated region body
PF: predicated region fallthrough
CT: control target
= control target key end

     0   :  { %vm39_vm0 = vcmask 392192   ;;  %vm210_vm6 = vcmask 7168   ;;  %s383_s1 = inlined_call_operand.vmem [shape: bf16[48,128], index: 1, kind: input, shape index: {}]   ;;  %s384_s3 = inlined_call_operand.vmem [shape: bf16[128,128], index: 3, kind: input, shape index: {}]   ;;  %s385_s2 = inlined_call_operand.vmem [shape: f32[1,128], index: 2, kind: input, shape index: {}]   ;;  %s386_s0 = inlined_call_operand.vmem [shape: bf16[8,48], index: 0, kind: input, shape index: {}]   ;;  %s387_s4 = inlined_call_operand.vmem [shape: f32[1,128], index: 4, kind: input, shape index: {}]   ;;  %s388_s5 = inlined_call_operand.vmem [shape: f32[1,48], index: 5, kind: input, shape index: {}]   ;;  %s389_s6 = inlined_call_operand.vmem [shape: f32[1,128], index: 6, kind: input, shape index: {}]   ;;  %s390_s7 = inlined_call_operand.<no memory space> [shape: f32[1,1], index: 7, kind: input, shape index: {}]   ;;  %s391_s8 = inlined_call_operand.vmem [shape: f32[8,1], index: 8, kind: output, shape index: {}]  }
   0x1   :  { %v264_v0 = vld [vmem:[%s383_s1 + $0x10] sm:$0xff]  ;;  %v272_v1 = vld [vmem:[%s384_s3 + $0x38] sm:$0xff]  ;;  %v263_v2 = vld [vmem:[%s383_s1 + $0x8] sm:$0xff]  ;;  %v13_v33 = vstv %s390_s7 }
   0x2   :  { %79 = vmatpush.bf16.msra.mxu0 %v264_v0  ;;  %159 = vmatpush.bf16.msra.mxu1 %v272_v1  ;;  %v271_v3 = vld [vmem:[%s384_s3 + $0x30] sm:$0xff]  ;;  %v262_v4 = vld [vmem:[%s383_s1] sm:$0xff]  ;;  %v270_v5 = vld [vmem:[%s384_s3 + $0x28] sm:$0xff]  ;;  %14 = vst [vmem:[#allocation2] sm:$0x1] %v13_v33 }
   0x3   :  { %v32_v6 = vld [vmem:[%s386_s0] sm:$0xf]  ;;  %v268_v8 = vld [vmem:[%s384_s3 + $0x18] sm:$0xff]  ;;  %v267_v9 = vld [vmem:[%s384_s3 + $0x10] sm:$0xff] }
   0x4   :  { %v269_v7 = vld [vmem:[%s384_s3 + $0x20] sm:$0xff]  ;;  %v266_v10 = vld [vmem:[%s384_s3 + $0x8] sm:$0xff]  ;;  %v33_v19 = vunpack.c.l.bf16 %v32_v6 }
   0x5   :  { %v265_v11 = vld [vmem:[%s384_s3] sm:$0xff] }
   0x6   :  { %80 = vmatpush.bf16.msra.mxu0 %v263_v2  ;;  %160 = vmatpush.bf16.msra.mxu1 %v271_v3  ;;  %v273_v12 = vld [vmem:[%s385_s2] ss:$0 sm:$0xff] }
   0x7   :  { %v275_v20 = vld [vmem:[%s388_s5] ss:$0 sm:$0xff] }
   0x8   :  { %v38_v21 = vmul.f32 %v275_v20, %v33_v19  ;;  %v274_v23 = vld [vmem:[%s387_s4] ss:$0 sm:$0xff] }
   0x9   :  { %v276_v28 = vld [vmem:[%s389_s6] ss:$0 sm:$0xff] }
   0xa   :  { %81 = vmatpush.bf16.msra.mxu0 %v262_v4  ;;  %161 = vmatpush.bf16.msra.mxu1 %v270_v5  ;;  %v40_v22 = vsel %vm39_vm0, %v38_v21, 0.0  ;;  %v277_v35 = vld [vmem:[#allocation2] ss:$0 sm:$0xff] }
   0xb   :  { %41 = vadd.xlane.f32.xlu0 %v40_v22 }
   0xd   :  { %228 = vmatmul.msk.bf16.vlgmr.msra.gmra.mxu0 %vm39_vm0, %v32_v6 }
   0xe   :  { %162 = vmatpush.bf16.msra.mxu1 %v269_v7 }
  0x12   :  { %163 = vmatpush.bf16.msra.mxu1 %v268_v8 }
  0x16   :  { %164 = vmatpush.bf16.msra.mxu1 %v267_v9 }
  0x1a   :  { %165 = vmatpush.bf16.msra.mxu1 %v266_v10 }
  0x1e   :  { %166 = vmatpush.bf16.msra.mxu1 %v265_v11 }
  0x7e   :  { %v42_v34 = vpop.xlane.xlu0 %41 }
  0x8a   :  { %v83_v13 = vpop.f32.mrf.mxu0 }
  0x8b   :  { %v84_v14 = vadd.f32 %v273_v12, %v83_v13 }
  0x8d   :  { %v88_v15 = vmul.f32 0.01, %v84_v14  ;;  %vm87_vm1 = vcmp.gt.f32.partialorder %v84_v14, 0.0 }
  0x8f   :  { %v89_v16 = vsel %vm87_vm1, %v84_v14, %v88_v15 }
  0x90   :  { %v90_v17 = vpack.c.bf16 %v89_v16, %v89_v16 }
  0x92   :  { %v85_v18 = vpop.f32.mrf.mxu0  ;;  %167 = vmatmul.bf16.vlgmr.msra.gmra.mxu1 %v90_v17 }
 0x10f   :  { %v168_v24 = vpop.f32.mrf.mxu1 }
 0x110   :  { %v169_v25 = vadd.f32 %v274_v23, %v168_v24 }
 0x112   :  { %vm172_vm2 = vcmp.gt.f32.partialorder %v169_v25, 0.0  ;;  %v173_v26 = vmul.f32 0.01, %v169_v25 }
 0x114   :  { %v174_v27 = vsel %vm172_vm2, %v169_v25, %v173_v26 }
 0x115   :  { %vm175_vm3 = vcmp.gt.f32.partialorder %v174_v27, 0.0  ;;  %v176_v29 = vmul.f32 0.01, %v174_v27 }
 0x117   :  { %v170_v30 = vpop.f32.mrf.mxu1  ;;  %v177_v31 = vsel %vm175_vm3, %v174_v27, %v176_v29 }
 0x118   :  { %v182_v32 = vmul.f32 %v276_v28, %v177_v31 }
 0x11a   :  { %183 = vadd.xlane.f32.xlu0 %v182_v32 }
 0x18d   :  { %v184_v36 = vpop.xlane.xlu0 %183 }
 0x18e   :  { %v185_v37 = vadd.f32 %v184_v36, %v42_v34 }
 0x190   :  { %v190_v38 = vadd.f32 %v277_v35, %v185_v37 }
 0x192   :  { %v261_v39 = vmul.f32 -1.442695, %v190_v38 }
 0x194   :  { %278 = vpow2.f32 %v261_v39 }
 0x19a   :  { %v279_v40 = vpop.eup %278 }
 0x19b   :  { %v194_v41 = vadd.f32 1.0, %v279_v40 }
 0x19d   :  { %280 = vrcp.f32 %v194_v41  ;;  %v206_v45 = vand.u32 2147483648, %v194_v41  ;;  %v204_v47 = vand.u32 2147483647, %v194_v41  ;;  %vm200_vm5 = vweird.f32 %v194_v41 }
 0x19f   :  { %v207_v49 = vor.u32 1.1754944e-38, %v206_v45  ;;  %vm205_vm8 = vcmp.eq.f32.partialorder %v204_v47, 8.507059e+37 }
 0x1a3   :  { %v281_v42 = vpop.eup %280 }
 0x1a4   :  { %v196_v43 = vmul.f32 %v281_v42, %v194_v41  ;;  %vm201_vm4 = vweird.f32 %v281_v42 }
 0x1a5   :  { %vm202_vm7 = vmor %vm200_vm5, %vm201_vm4 }
 0x1a6   :  { %v197_v44 = vsub.f32 1.0, %v196_v43 }
 0x1a8   :  { %v198_v46 = vmul.f32 %v281_v42, %v197_v44 }
 0x1aa   :  { %v199_v48 = vadd.f32 %v281_v42, %v198_v46 }
 0x1ac   :  { %v203_v50 = vsel %vm202_vm7, %v281_v42, %v199_v48 }
 0x1ad   :  { %v208_v51 = vsel %vm205_vm8, %v207_v49, %v203_v50 }
 0x1ae   :  { %211 = vst.msk [vmem:[%s391_s8] sm:$0xff] %vm210_vm6, %v208_v51 }

</bundles_post_ra>
